<compile_context>
chip_gen: v7x
topology: tpu7x:2x2x1
jax: 0.10.0
libtpu: 0.0.40
codegen_flags: <defaults>
</compile_context>

<pallas_src>
import functools

import jax
import jax.numpy as jnp
from jax.experimental import pallas as pl
from jax.experimental.pallas import tpu as pltpu


def _round_up(x, m):
    return (x + m - 1) // m * m


def _largest_divisor_leq(n, cap):
    cap = max(1, min(n, cap))
    for d in range(cap, 0, -1):
        if n % d == 0:
            return d
    return 1


def _chip_budgets():
    """VMEM-derived per-chip budgets; conservative (v7x-like) fallback if query fails."""
    vmem_bytes = None
    try:
        vmem_bytes = int(pltpu.get_tpu_info().vmem_capacity_bytes)
    except Exception:
        vmem_bytes = None
    if vmem_bytes is not None and vmem_bytes >= 128 * 1024 * 1024:
        # v5e / v6e: 128 MiB VMEM, single TensorCore.
        return {
            "single_pass_max": 20 * 1024 * 1024,   # per-batch (C, HW) tile cap
            "vmem_limit": 96 * 1024 * 1024,
            "target_tile": 4 * 1024 * 1024,
            "two_tc": False,
        }
    # v7x (64 MiB VMEM per TensorCore, 2 TCs) or unknown chip: be conservative.
    return {
        "single_pass_max": 10 * 1024 * 1024,
        "vmem_limit": 48 * 1024 * 1024,
        "target_tile": 4 * 1024 * 1024,
        "two_tc": True,
    }


def _scse_fused_kernel(x_ref, w1_ref, b1_ref, w2_ref, b2_ref, wc_ref, bc_ref,
                       o_ref, *, inv_hw):
    """Block: x_ref (Bt, C, HW) f32. Gate math is batched across Bt."""
    x = x_ref[...]                                              # (Bt, C, HW)
    bt, c, _ = x.shape
    cr = w1_ref.shape[1]

    # ---- cSE: batched spatial mean -> tiny MLP -> sigmoid channel gate ----
    s = jnp.sum(x, axis=-1, keepdims=True) * inv_hw             # (Bt, C, 1)
    w1b = jnp.broadcast_to(w1_ref[...], (bt, cr, c))            # (Bt, Cr, C)
    h = jnp.einsum("brc,bci->bri", w1b, s,
                   preferred_element_type=jnp.float32) + b1_ref[...]
    h = jnp.maximum(h, 0.0)                                     # (Bt, Cr, 1)
    w2b = jnp.broadcast_to(w2_ref[...], (bt, c, cr))            # (Bt, C, Cr)
    z = jnp.einsum("bcr,bri->bci", w2b, h,
                   preferred_element_type=jnp.float32) + b2_ref[...]
    gate_c = jax.nn.sigmoid(z)                                  # (Bt, C, 1)

    # ---- sSE: batched 1x1 conv over channels -> sigmoid spatial gate ----
    wcb = jnp.broadcast_to(wc_ref[...], (bt, 1, c))             # (Bt, 1, C)
    sz = jnp.einsum("boc,bcn->bon", wcb, x,
                    preferred_element_type=jnp.float32) + bc_ref[0]
    gate_s = jax.nn.sigmoid(sz)                                 # (Bt, 1, HW)

    # ---- scSE = x*gate_c + x*gate_s, applied once on the full block ----
    o_ref[...] = (x * (gate_c + gate_s)).astype(o_ref.dtype)


def _scse_apply_kernel(x_ref, gc_ref, wc_ref, bc_ref, o_ref):
    """Split path: x_ref (1, C, tHW), gc_ref (1, C, 1); applies both gates."""
    x = x_ref[0]                                                # (C, tHW)
    gc = gc_ref[0]                                              # (C, 1)
    sz = jnp.dot(wc_ref[...], x, preferred_element_type=jnp.float32) + bc_ref[0]
    gate_s = jax.nn.sigmoid(sz)                                 # (1, tHW)
    o_ref[0] = (x * (gc + gate_s)).astype(o_ref.dtype)


def scse_forward(x, w1, b1, w2, b2, wconv, bconv, *, force_split=False,
                 split_lane_tile=None):
    """x: (B, C, H, W) float32. Returns (B, C, H, W). Same math as the PyTorch module."""
    B, C, H, W = x.shape
    HW = H * W
    Cr = w1.shape[0]
    itemsize = jnp.dtype(x.dtype).itemsize
    budgets = _chip_budgets()

    # No padding / no output slice: Pallas handles non-128 lane tails with masked
    # stores and masked lane reductions; this saves whole extra HBM passes.
    x_flat = x.reshape(B, C, HW)
    wc_row = wconv.reshape(1, C)                 # Conv2d(C,1,1) weight -> (1, C)
    bc_vec = bconv.reshape(1)                    # scalar bias -> SMEM

    # VMEM footprint of one batch element's (C, HW) tile (incl. (8,128) tiling pad).
    per_b_vmem = _round_up(C, 8) * _round_up(HW, 128) * itemsize
    single_pass = (not force_split) and per_b_vmem <= budgets["single_pass_max"]

    if single_pass:
        # Pack Bt batch elements per grid step (~target_tile bytes streamed/step).
        # On 2-TC chips keep >= 2 grid steps when B >= 2 so both cores get work;
        # on 1-TC chips pack purely to the byte target.
        bt_cap = max(1, budgets["target_tile"] // per_b_vmem)
        if budgets["two_tc"] and B >= 2:
            bt_cap = min(bt_cap, B // 2)
        Bt = _largest_divisor_leq(B, bt_cap)

        kernel = functools.partial(_scse_fused_kernel, inv_hw=1.0 / HW)
        out_flat = pl.pallas_call(
            kernel,
            out_shape=jax.ShapeDtypeStruct((B, C, HW), x.dtype),
            grid=(B // Bt,),
            in_specs=[
                pl.BlockSpec((Bt, C, HW), lambda i: (i, 0, 0)),
                pl.BlockSpec((1, Cr, C), lambda i: (0, 0, 0)),
                pl.BlockSpec((1, Cr, 1), lambda i: (0, 0, 0)),
                pl.BlockSpec((1, C, Cr), lambda i: (0, 0, 0)),
                pl.BlockSpec((1, C, 1), lambda i: (0, 0, 0)),
                pl.BlockSpec((1, 1, C), lambda i: (0, 0, 0)),
                pl.BlockSpec(memory_space=pltpu.MemorySpace.SMEM),
            ],
            out_specs=pl.BlockSpec((Bt, C, HW), lambda i: (i, 0, 0)),
            compiler_params=pltpu.CompilerParams(
                dimension_semantics=("parallel",),
                vmem_limit_bytes=budgets["vmem_limit"]),
        )(x_flat,
          w1.reshape(1, Cr, C), b1.reshape(1, Cr, 1),
          w2.reshape(1, C, Cr), b2.reshape(1, C, 1),
          wconv.reshape(1, 1, C), bc_vec)
    else:
        # Two-pass path for feature maps too large for a full-(C, HW) VMEM tile:
        # tiny cSE channel gate in plain XLA, then a streaming Pallas kernel tiled
        # over (batch, spatial) applies both gates in one read/write of x.
        s = x_flat.mean(-1)                                            # (B, C)
        h = jax.nn.relu(s @ w1.T + b1)                                 # (B, Cr)
        z = h @ w2.T + b2                                              # (B, C)
        gate_c = jax.nn.sigmoid(z).reshape(B, C, 1).astype(x.dtype)    # (B, C, 1)

        # Fixed lane tile (multiple of 128) + cdiv grid: the last tile may be
        # partial; Pallas masks its stores, so correctness is unaffected and no
        # divisor search can collapse the tile to 128 lanes.
        if split_lane_tile is None:
            lane_tile = max(1, budgets["target_tile"] // (C * itemsize))
            lane_tile = max(128, (lane_tile // 128) * 128)
        else:
            lane_tile = split_lane_tile
        if HW <= lane_tile:
            tHW, n_t = HW, 1
        else:
            tHW, n_t = lane_tile, pl.cdiv(HW, lane_tile)

        out_flat = pl.pallas_call(
            _scse_apply_kernel,
            out_shape=jax.ShapeDtypeStruct((B, C, HW), x.dtype),
            grid=(B, n_t),
            in_specs=[
                pl.BlockSpec((1, C, tHW), lambda b, t: (b, 0, t)),
                pl.BlockSpec((1, C, 1), lambda b, t: (b, 0, 0)),
                pl.BlockSpec((1, C), lambda b, t: (0, 0)),
                pl.BlockSpec(memory_space=pltpu.MemorySpace.SMEM),
            ],
            out_specs=pl.BlockSpec((1, C, tHW), lambda b, t: (b, 0, t)),
            compiler_params=pltpu.CompilerParams(
                dimension_semantics=("parallel", "parallel"),
                vmem_limit_bytes=budgets["vmem_limit"]),
        )(x_flat, gate_c, wc_row, bc_vec)

    return out_flat.reshape(B, C, H, W)


def scse_reference(x, w1, b1, w2, b2, wconv, bconv):
    """Pure-JAX reference mirroring the PyTorch module."""
    B, C, H, W = x.shape
    # cSE
    s = x.reshape(B, C, H * W).mean(-1)                     # (B, C)
    h = jax.nn.relu(s @ w1.T + b1)                          # (B, Cr)
    z = h @ w2.T + b2                                       # (B, C)
    gate_c = jax.nn.sigmoid(z)[:, :, None, None]            # (B, C, 1, 1)
    cse = x * gate_c
    # sSE
    sz = jnp.einsum("bchw,c->bhw", x, wconv.reshape(-1)) + bconv.reshape(())
    gate_s = jax.nn.sigmoid(sz)[:, None, :, :]              # (B, 1, H, W)
    sse = x * gate_s
    return cse + sse


if __name__ == "__main__":
    key = jax.random.PRNGKey(0)
    kx, k1, k2, k3, k4, k5, k6, kx2, kx3 = jax.random.split(key, 9)

    B, C, H, W = 2, 32, 16, 16
    r = 16
    Cr = C // r  # 2

    x = jax.random.normal(kx, (B, C, H, W), dtype=jnp.float32)

    # Parameters (nn.Linear weight is (out, in); Conv2d(C,1,1) weight is (1,C,1,1)).
    w1 = 0.1 * jax.random.normal(k1, (Cr, C), dtype=jnp.float32)
    b1 = 0.1 * jax.random.normal(k2, (Cr,), dtype=jnp.float32)
    w2 = 0.1 * jax.random.normal(k3, (C, Cr), dtype=jnp.float32)
    b2 = 0.1 * jax.random.normal(k4, (C,), dtype=jnp.float32)
    wconv = 0.1 * jax.random.normal(k5, (1, C, 1, 1), dtype=jnp.float32)
    bconv = 0.1 * jax.random.normal(k6, (1,), dtype=jnp.float32)

    ref = scse_reference(x, w1, b1, w2, b2, wconv, bconv)

    # Single-pass fused kernel (HW = 256, lane-aligned).
    out = jax.block_until_ready(scse_forward(x, w1, b1, w2, b2, wconv, bconv))
    assert out.shape == (B, C, H, W)
    assert jnp.allclose(out, ref, atol=1e-5, rtol=1e-5), "single-pass mismatch"

    # Split (two-pass) path used for very large feature maps — force it here.
    out_split = jax.block_until_ready(
        scse_forward(x, w1, b1, w2, b2, wconv, bconv, force_split=True))
    assert jnp.allclose(out_split, ref, atol=1e-5, rtol=1e-5), "split-path mismatch"

    # Non-multiple-of-128 spatial size (HW = 100): exercises the unpadded path with
    # masked lane tails and the true-HW mean, on both paths.
    B2, H2, W2 = 3, 10, 10
    x2 = jax.random.normal(kx2, (B2, C, H2, W2), dtype=jnp.float32)
    ref2 = scse_reference(x2, w1, b1, w2, b2, wconv, bconv)
    out2 = jax.block_until_ready(scse_forward(x2, w1, b1, w2, b2, wconv, bconv))
    assert jnp.allclose(out2, ref2, atol=1e-5, rtol=1e-5), "padded-HW mismatch"
    out2s = jax.block_until_ready(
        scse_forward(x2, w1, b1, w2, b2, wconv, bconv, force_split=True))
    assert jnp.allclose(out2s, ref2, atol=1e-5, rtol=1e-5), "split small-HW mismatch"

    # Split path with a genuinely partial (masked) trailing lane tile:
    # HW = 144 with a forced 128-lane tile -> 2 tiles, last one 16 valid lanes.
    B3, H3, W3 = 2, 12, 12
    x3 = jax.random.normal(kx3, (B3, C, H3, W3), dtype=jnp.float32)
    ref3 = scse_reference(x3, w1, b1, w2, b2, wconv, bconv)
    out3 = jax.block_until_ready(
        scse_forward(x3, w1, b1, w2, b2, wconv, bconv,
                     force_split=True, split_lane_tile=128))
    assert jnp.allclose(out3, ref3, atol=1e-5, rtol=1e-5), "partial-tile mismatch"

    # TODO(synk): optional bf16 streaming of x/out (with f32 gate math) would halve
    # HBM bytes but changes numerics vs the f32 PyTorch reference, so it is left out.

    print("KERNEL_OK")
</pallas_src>

<mosaic_0001>
module attributes {stable_mosaic.version = 11 : i64} {
  func.func @_scse_fused_kernel(%arg0: i32, %arg1: memref<1x32x256xf32, #tpu.memory_space<vmem>>, %arg2: memref<1x2x32xf32, #tpu.memory_space<vmem>>, %arg3: memref<1x2x1xf32, #tpu.memory_space<vmem>>, %arg4: memref<1x32x2xf32, #tpu.memory_space<vmem>>, %arg5: memref<1x32x1xf32, #tpu.memory_space<vmem>>, %arg6: memref<1x1x32xf32, #tpu.memory_space<vmem>>, %arg7: memref<1xf32, #tpu.memory_space<smem>>, %arg8: memref<1x32x256xf32, #tpu.memory_space<vmem>>) attributes {dimension_semantics = [#tpu.dimension_semantics<parallel>], iteration_bounds = array<i64: 2>, scalar_prefetch = 0 : i64, scratch_operands = 0 : i64, tpu.core_type = #tpu.core_type<tc>, window_params = [{transform_indices = @transform_0, window_bounds = array<i64: 1, 32, 256>}, {pipeline_mode = #tpu.pipeline_mode<synchronous>, transform_indices = @transform_1, window_bounds = array<i64: 1, 2, 32>}, {pipeline_mode = #tpu.pipeline_mode<synchronous>, transform_indices = @transform_2, window_bounds = array<i64: 1, 2, 1>}, {pipeline_mode = #tpu.pipeline_mode<synchronous>, transform_indices = @transform_3, window_bounds = array<i64: 1, 32, 2>}, {pipeline_mode = #tpu.pipeline_mode<synchronous>, transform_indices = @transform_4, window_bounds = array<i64: 1, 32, 1>}, {pipeline_mode = #tpu.pipeline_mode<synchronous>, transform_indices = @transform_5, window_bounds = array<i64: 1, 1, 32>}, {transform_indices = @transform_6, window_bounds = array<i64: 1>}, {transform_indices = @transform_7, window_bounds = array<i64: 1, 32, 256>}]} {
    %c0 = arith.constant 0 : index
    %c0_0 = arith.constant 0 : index
    %c0_1 = arith.constant 0 : index
    %0 = vector.load %arg1[%c0, %c0_0, %c0_1] : memref<1x32x256xf32, #tpu.memory_space<vmem>>, vector<1x32x256xf32>
    %cst = arith.constant dense<0.000000e+00> : vector<1x32xf32>
    %1 = vector.multi_reduction <add>, %0, %cst [2] : vector<1x32x256xf32> to vector<1x32xf32>
    %2 = vector.shape_cast %1 : vector<1x32xf32> to vector<1x32x1xf32>
    %cst_2 = arith.constant 3.906250e-03 : f32
    %3 = vector.broadcast %cst_2 : f32 to vector<1x32x1xf32>
    %4 = arith.mulf %2, %3 : vector<1x32x1xf32>
    %c0_3 = arith.constant 0 : index
    %c0_4 = arith.constant 0 : index
    %c0_5 = arith.constant 0 : index
    %5 = vector.load %arg2[%c0_3, %c0_4, %c0_5] : memref<1x2x32xf32, #tpu.memory_space<vmem>>, vector<1x2x32xf32>
    "tpu.trace_start"() <{level = 10 : i32, message = "brc,bci->bri"}> : () -> ()
    %cst_6 = arith.constant dense<0.000000e+00> : vector<1x2x1xf32>
    %6 = tpu.matmul %5, %4, %cst_6 {dimension_numbers = #tpu.dot_dimension_numbers<[2], [1], [1], [2], [0, 0, 0, 1, 1, 2], [0], [0]>} : vector<1x2x32xf32>, vector<1x32x1xf32>, vector<1x2x1xf32> -> vector<1x2x1xf32>
    "tpu.trace_stop"() : () -> ()
    %c0_7 = arith.constant 0 : index
    %c0_8 = arith.constant 0 : index
    %c0_9 = arith.constant 0 : index
    %7 = vector.load %arg3[%c0_7, %c0_8, %c0_9] : memref<1x2x1xf32, #tpu.memory_space<vmem>>, vector<1x2x1xf32>
    %8 = arith.addf %6, %7 : vector<1x2x1xf32>
    %cst_10 = arith.constant 0.000000e+00 : f32
    %9 = vector.broadcast %cst_10 : f32 to vector<1x2x1xf32>
    %10 = arith.maximumf %8, %9 : vector<1x2x1xf32>
    %c0_11 = arith.constant 0 : index
    %c0_12 = arith.constant 0 : index
    %c0_13 = arith.constant 0 : index
    %11 = vector.load %arg4[%c0_11, %c0_12, %c0_13] : memref<1x32x2xf32, #tpu.memory_space<vmem>>, vector<1x32x2xf32>
    "tpu.trace_start"() <{level = 10 : i32, message = "bcr,bri->bci"}> : () -> ()
    %cst_14 = arith.constant dense<0.000000e+00> : vector<1x32x1xf32>
    %12 = tpu.matmul %11, %10, %cst_14 {dimension_numbers = #tpu.dot_dimension_numbers<[2], [1], [1], [2], [0, 0, 0, 1, 1, 2], [0], [0]>} : vector<1x32x2xf32>, vector<1x2x1xf32>, vector<1x32x1xf32> -> vector<1x32x1xf32>
    "tpu.trace_stop"() : () -> ()
    %c0_15 = arith.constant 0 : index
    %c0_16 = arith.constant 0 : index
    %c0_17 = arith.constant 0 : index
    %13 = vector.load %arg5[%c0_15, %c0_16, %c0_17] : memref<1x32x1xf32, #tpu.memory_space<vmem>>, vector<1x32x1xf32>
    %14 = arith.addf %12, %13 : vector<1x32x1xf32>
    %15 = arith.negf %14 : vector<1x32x1xf32>
    %16 = math.exp %15 : vector<1x32x1xf32>
    %cst_18 = arith.constant 1.000000e+00 : f32
    %17 = vector.broadcast %cst_18 : f32 to vector<1x32x1xf32>
    %18 = arith.addf %17, %16 : vector<1x32x1xf32>
    %19 = arith.divf %17, %18 : vector<1x32x1xf32>
    %c0_19 = arith.constant 0 : index
    %c0_20 = arith.constant 0 : index
    %c0_21 = arith.constant 0 : index
    %20 = vector.load %arg6[%c0_19, %c0_20, %c0_21] : memref<1x1x32xf32, #tpu.memory_space<vmem>>, vector<1x1x32xf32>
    "tpu.trace_start"() <{level = 10 : i32, message = "boc,bcn->bon"}> : () -> ()
    %cst_22 = arith.constant dense<0.000000e+00> : vector<1x1x256xf32>
    %21 = tpu.matmul %20, %0, %cst_22 {dimension_numbers = #tpu.dot_dimension_numbers<[2], [1], [1], [2], [0, 0, 0, 1, 1, 2], [0], [0]>} : vector<1x1x32xf32>, vector<1x32x256xf32>, vector<1x1x256xf32> -> vector<1x1x256xf32>
    "tpu.trace_stop"() : () -> ()
    %c0_23 = arith.constant 0 : index
    %22 = memref.load %arg7[%c0_23] : memref<1xf32, #tpu.memory_space<smem>>
    %23 = vector.broadcast %22 : f32 to vector<1x1x256xf32>
    %24 = arith.addf %21, %23 : vector<1x1x256xf32>
    %25 = arith.negf %24 : vector<1x1x256xf32>
    %26 = math.exp %25 : vector<1x1x256xf32>
    %cst_24 = arith.constant 1.000000e+00 : f32
    %27 = vector.broadcast %cst_24 : f32 to vector<1x1x256xf32>
    %28 = arith.addf %27, %26 : vector<1x1x256xf32>
    %29 = arith.divf %27, %28 : vector<1x1x256xf32>
    %30 = vector.broadcast %19 : vector<1x32x1xf32> to vector<1x32x256xf32>
    %31 = vector.broadcast %29 : vector<1x1x256xf32> to vector<1x32x256xf32>
    %32 = arith.addf %30, %31 : vector<1x32x256xf32>
    %33 = arith.mulf %0, %32 : vector<1x32x256xf32>
    %c0_25 = arith.constant 0 : index
    %c0_26 = arith.constant 0 : index
    %c0_27 = arith.constant 0 : index
    %34 = vector.load %arg8[%c0_25, %c0_26, %c0_27] : memref<1x32x256xf32, #tpu.memory_space<vmem>>, vector<1x32x256xf32>
    tpu.vector_store %arg8[%c0_25, %c0_26, %c0_27], %33 {strides = array<i32>} : memref<1x32x256xf32, #tpu.memory_space<vmem>>, vector<1x32x256xf32>,
    return
  }
  func.func @transform_0(%arg0: i32) -> (i32, i32, i32) {
    %c0_i32 = arith.constant 0 : i32
    %c0_i32_0 = arith.constant 0 : i32
    %c0_i32_1 = arith.constant 0 : i32
    return %arg0, %c0_i32, %c0_i32_0 : i32, i32, i32
  }
  func.func @transform_1(%arg0: i32) -> (i32, i32, i32) {
    %c0_i32 = arith.constant 0 : i32
    %c0_i32_0 = arith.constant 0 : i32
    %c0_i32_1 = arith.constant 0 : i32
    %c0_i32_2 = arith.constant 0 : i32
    return %c0_i32, %c0_i32_0, %c0_i32_1 : i32, i32, i32
  }
  func.func @transform_2(%arg0: i32) -> (i32, i32, i32) {
    %c0_i32 = arith.constant 0 : i32
    %c0_i32_0 = arith.constant 0 : i32
    %c0_i32_1 = arith.constant 0 : i32
    %c0_i32_2 = arith.constant 0 : i32
    return %c0_i32, %c0_i32_0, %c0_i32_1 : i32, i32, i32
  }
  func.func @transform_3(%arg0: i32) -> (i32, i32, i32) {
    %c0_i32 = arith.constant 0 : i32
    %c0_i32_0 = arith.constant 0 : i32
    %c0_i32_1 = arith.constant 0 : i32
    %c0_i32_2 = arith.constant 0 : i32
    return %c0_i32, %c0_i32_0, %c0_i32_1 : i32, i32, i32
  }
  func.func @transform_4(%arg0: i32) -> (i32, i32, i32) {
    %c0_i32 = arith.constant 0 : i32
    %c0_i32_0 = arith.constant 0 : i32
    %c0_i32_1 = arith.constant 0 : i32
    %c0_i32_2 = arith.constant 0 : i32
    return %c0_i32, %c0_i32_0, %c0_i32_1 : i32, i32, i32
  }
  func.func @transform_5(%arg0: i32) -> (i32, i32, i32) {
    %c0_i32 = arith.constant 0 : i32
    %c0_i32_0 = arith.constant 0 : i32
    %c0_i32_1 = arith.constant 0 : i32
    %c0_i32_2 = arith.constant 0 : i32
    return %c0_i32, %c0_i32_0, %c0_i32_1 : i32, i32, i32
  }
  func.func @transform_6(%arg0: i32) -> i32 {
    %c0_i32 = arith.constant 0 : i32
    %c0_i32_0 = arith.constant 0 : i32
    return %c0_i32 : i32
  }
  func.func @transform_7(%arg0: i32) -> (i32, i32, i32) {
    %c0_i32 = arith.constant 0 : i32
    %c0_i32_0 = arith.constant 0 : i32
    %c0_i32_1 = arith.constant 0 : i32
    return %arg0, %c0_i32, %c0_i32_0 : i32, i32, i32
  }
}

</mosaic_0001>

<bundles_post_ra>
// kernel: tpu_custom_call.1
= control target key start
LH: loop header
LB: loop body
LE: loop exit
PB: predicated region body
PF: predicated region fallthrough
CT: control target
= control target key end

     0   :  { %s1309_s0 = inlined_call_operand.hbm [shape: f32[2,32,256], index: 0, kind: input, shape index: {}]   ;;  %s1310_s1 = inlined_call_operand.vmem [shape: f32[1,2,32], index: 1, kind: input, shape index: {}]   ;;  %s1311_s2 = inlined_call_operand.vmem [shape: f32[1,2,1], index: 2, kind: input, shape index: {}]   ;;  %s1312_s3 = inlined_call_operand.vmem [shape: f32[1,32,2], index: 3, kind: input, shape index: {}]   ;;  %s1313_s4 = inlined_call_operand.vmem [shape: f32[1,32,1], index: 4, kind: input, shape index: {}]   ;;  %s1314_s5 = inlined_call_operand.vmem [shape: f32[1,1,32], index: 5, kind: input, shape index: {}]   ;;  %s1315_s6 = inlined_call_operand.<no memory space> [shape: f32[1], index: 6, kind: input, shape index: {}]   ;;  %s1316_s7 = inlined_call_operand.hbm [shape: f32[2,32,256], index: 7, kind: output, shape index: {}]  }
   0x1   :  { %12 = sst [smem:[#allocation2]] %s1315_s6 }
   0x2   :  { %13 = vsyncpa [#allocation4], 0 }
   0x3   :  { %15 = vsyncpa [#allocation4 + $0x1], 0 }
   0x4   :  { %16 = vsyncpa [#allocation5], 0 }
   0x5   :  { %18 = vsyncpa [#allocation5 + $0x1], 0  ;;  %s1064_s26 = smov 0   ;;  %s1066_s27 = smov 0  }
   0x6   :  { %s1068_s28 = smov 0   ;;  %s1070_s29 = smov 0  }
   0x7 LB: > { %s1085_s6 = sadd.s32 4294967295, %s1009_s29   ;;  %s761_s30 = sadd.s32 4294967294, %s1009_s29   ;;  %s1009_s29 = sphi %s1070_s29, %s1329_s29   ;;  %s1005_s28 = sphi %s1068_s28, %s1328_s28   ;;  %s1001_s27 = sphi %s1066_s27, %s1327_s27   ;;  %s997_s26 = sphi %s1064_s26, %s1326_s26  }
   0x8   : > { %s1089_s8 = sadd.s32 1, %s1009_s29   ;;  %s31_s9 = sadd.s32 1, %s1005_s28 }
   0x9   : > { %s28_s10 = ssub.s32 %s1009_s29, %s1089_s8  ;;  %p38_p0 = scmp.ne.s32.totalorder %s1005_s28, %s1001_s27 }
   0xa   : > { %p29_p1 = scmp.eq.s32.totalorder %s28_s10, 0  ;;  %p39_p2 = scmp.eq.s32.totalorder %s1009_s29, 0 }
   0xb   : > { %p44_p3 = scmp.ne.s32.totalorder %s1001_s27, %s997_s26  ;;  %p45_p4 = scmp.eq.s32.totalorder %s1085_s6, 0 }
   0xc   : > { %s1101_s11 = scalar_select %p29_p1, %s1005_s28, %s31_s9  }
   0xd   : > { %p1103_p5 = por %p39_p2, %p38_p0  ;;  %p1107_p6 = por %p45_p4, %p44_p3 }
   0xe   : > { %p194_p7 = scmp.eq.s32.totalorder %s1085_s6, 1  ;;  %p200_p8 = scmp.eq.s32.totalorder %s761_s30, 1 }
   0xf   : > { %p845_p10 = scmp.lt.s32.totalorder %s1009_s29, 2  ;;  %s238_s16 = sand.u32 1, %s1005_s28  }
  0x10   : > { %p1114_p11 = por %p194_p7, %p38_p0  ;;  %p1118_p12 = por %p200_p8, %p44_p3 }
  0x11   : > { %s788_s17 = sshll.u32 %s1009_s29, 10  ;;  %s764_s18 = sshll.u32 %s238_s16, 6 }
  0x12   : > { %s1320_s14 = scalar_select %p1114_p11, 1, 0 }
  0x13   : > { %s1321_s15 = scalar_select %p1118_p12, 1, 0 }
  0x14   : > { %s1127_s21 = scalar_lea.hbm %s1309_s0, %s788_s17  ;;  %s242_s22 = scalar_lea.vmem [#allocation3], %s764_s18 }
  0x15   : > { %s249_s23 = sshll.u32 %s242_s22, 4  ;;  %p1131_p13 = pnand %p845_p10, %p1103_p5  ;;  %s1135_s23 = int_to_ptr.vmem [resolvable:$true] %s249_s23 }
  0x16   : > { %s1137_s25 = scalar_lea.sflag [#allocation4], %s238_s16  ;;  %s913_s30 = scalar_lea.hbm %s1127_s21, 1024 }
  0x17   : > { %p914_p0 = scmp.ne.s32.totalorder %s1127_s21, %s913_s30  ;;  %p915_p1 = pneg %p1131_p13 }
  0x18   : > { %s918_s12 = scalar_lea.hbm %s1309_s0, 2048  ;;  %p919_p4 = scmp.lt.u32.totalorder %s1127_s21, %s1309_s0 }
  0x19   : > { %p916_p2 = pnand %p915_p1, %p914_p0  ;;  %p920_p5 = scmp.lt.u32.totalorder %s918_s12, %s913_s30 }
  0x1a   : > { %p922_p8 = scmp.lt.u32.totalorder %s913_s30, %s1127_s21 }
  0x1b   : > { %p917_p3 = pneg %p916_p2  ;;  %p921_p7 = por %p920_p5, %p919_p4 }
  0x1d   : > { %p923_p10 = por %p922_p8, %p921_p7 }
  0x1f   : > { %p924_p9 = pnand %p923_p10, %p917_p3 }
  0x21   : > { %927 = shalt.err (!%p924_p9)
}
  0x22   : > { %s928_s16 = scalar_lea.vmem %s1135_s23, 1024  ;;  %s1011_s19 = smov [#allocation3]  }
  0x23   : > { %p929_p0 = scmp.ne.s32.totalorder %s1135_s23, %s928_s16  ;;  %s933_s20 = sshll.u32 %s1011_s19, 4  ;;  %s934_s20 = int_to_ptr.vmem [resolvable:$false] %s933_s20 }
  0x24   : > { %s935_s22 = scalar_lea.vmem %s934_s20, 2048  ;;  %p936_p11 = scmp.lt.s32.totalorder %s1135_s23, %s934_s20 }
  0x25   : > { %p931_p2 = pnand %p929_p0, %p915_p1  ;;  %p937_p4 = scmp.lt.s32.totalorder %s935_s22, %s928_s16 }
  0x27   : > { %p932_p12 = pneg %p931_p2  ;;  %p938_p5 = por %p937_p4, %p936_p11 }
  0x29   : > { %p939_p7 = pnand %p938_p5, %p932_p12 }
  0x2b   : > { %942 = shalt.err (!%p939_p7)
}
  0x2c   : > { %s1012_s30 = smov 256   ;;  %s1013_s9 = smov 16  }
  0x2d   : > { %840 = dma.hbm_to_vmem [thread:$0]  (!%p1131_p13), %s1127_s21, 1024, %s1135_s23, %s1137_s25, %s1012_s30, %s1012_s30, %s1013_s9  }
  0x2e   : > { %p767_p9 = scmp.ge.s32.totalorder %s1009_s29, 1  ;;  %p257_p1 = scmp.lt.s32.totalorder %s1009_s29, 3 }
  0x30   : > { %p258_p3 = pnand %p767_p9, %p257_p1 }
  0x31   : > { %s1168_s10 = sand.u32 (!%p258_p3), 1, %s1001_s27  }
  0x32   : > { %261 = sbr.rel (%p258_p3) target bundleno = 833 (0x341), region = 48  ;;  %s768_s12 = sshll.u32 (!%p258_p3), %s1168_s10, 6 }
  0x33   : > { %s264_s17 = scalar_lea.sflag (!%p258_p3), [#allocation4], %s1168_s10  ;;  %s267_s18 = scalar_lea.vmem (!%p258_p3), [#allocation3], %s768_s12 }
  0x39   : > { %988 = dma.done.wait (%p1107_p6), %s264_s17, 1024  }
  0x3a   : > { %990 = vsyncadd (%p1107_p6), %s264_s17, 4294966272  ;;  %v1178_v0 = vld [vmem:[%s267_s18 + $0x20] sm:$0xff]  ;;  %v1180_v1 = vld [vmem:[%s267_s18 + $0x28] sm:$0xff]  ;;  %v1014_v12 = vmov 0.0|0.0   ;;  %vm1015_vm0 = vmmov 0   ;;  %v1016_v13 = vmov 0.0  }
  0x3b   : > { %v1182_v2 = vld [vmem:[%s267_s18] sm:$0xff]  ;;  %v312_v3 = vadd.f32 %v1180_v1, %v1178_v0  ;;  %v1186_v4 = vld [vmem:[%s267_s18 + $0x8] sm:$0xff]  ;;  %v1188_v5 = vld [vmem:[%s267_s18 + $0x30] sm:$0xff]  ;;  %819 = vmatprep.subr.bf16.mxu0 %v1014_v12  ;;  %808 = vmatprep.mubr.msk.f32.mxu0 %vm1015_vm0, %v1016_v13  ;;  %vm324_vm1 = vcmask 261120   ;;  %vm407_vm2 = vcmask 15360   ;;  %vm420_vm3 = vcmask 1041408  }
  0x3c   : > { %v1190_v6 = vld [vmem:[%s267_s18 + $0x38] sm:$0xff]  ;;  %v306_v7 = vadd.f32 %v1186_v4, %v1182_v2  ;;  %v1194_v8 = vld [vmem:[%s267_s18 + $0x10] sm:$0xff]  ;;  %v322_v24 = vld [vmem:[%s1310_s1] sm:$0x3]  ;;  %v831_v36 = vpack.c.bf16 %v1188_v5, %v1178_v0  ;;  %v1017_v39 = vmov 0   ;;  %s534_s30 = sld [smem:[#allocation2]] }
  0x3d   : > { %v1196_v9 = vld [vmem:[%s267_s18 + $0x18] sm:$0xff]  ;;  %313 = vadd.xlane.f32.xlu1 %v312_v3  ;;  %v315_v10 = vadd.f32 %v1190_v6, %v1188_v5  ;;  %v399_v25 = vld [vmem:[%s1312_s3] sm:$0xff]  ;;  %v827_v32 = vpack.c.bf16 %v1194_v8, %v1182_v2  ;;  %v400_v33 = vld [vmem:[%s1312_s3 + $0x8] sm:$0xff]  ;;  %v829_v35 = vpack.c.bf16 %v1190_v6, %v1180_v1  ;;  %887 = vset.pattern.permute.xlu0 %v1017_v39  ;;  %s297_s9 = scalar_lea.vmem [#allocation6], %s768_s12  ;;  %s789_s17 = sshll.u32 %s1085_s6, 10 }
  0x3e   : > { %307 = vadd.xlane.f32.xlu0 %v306_v7  ;;  %v309_v11 = vadd.f32 %v1196_v9, %v1194_v8  ;;  %813 = vmatprep.mubr.msk.f32.mxu1 %vm407_vm2, %v399_v25  ;;  %v323_v26 = vld [vmem:[%s1311_s2] sm:$0x3]  ;;  %v825_v31 = vpack.c.bf16 %v1196_v9, %v1186_v4  ;;  %v401_v34 = vld [vmem:[%s1312_s3 + $0x10] sm:$0xff]  ;;  %v402_v37 = vld [vmem:[%s1312_s3 + $0x18] sm:$0xff]  ;;  %s688_s18 = sshll.u32 %s297_s9, 4  ;;  %s1261_s21 = scalar_lea.hbm %s1316_s7, %s789_s17  ;;  %s1263_s18 = int_to_ptr.vmem [resolvable:$true] %s688_s18 }
  0x3f   : > { %v533_v38 = vld [vmem:[%s1314_s5] sm:$0x1]  ;;  %888 = vset.pattern.permute.xlu1 %v1017_v39  ;;  %v404_v40 = vld [vmem:[%s1313_s4 + $0x8] sm:$0xff]  ;;  %v406_v46 = vld [vmem:[%s1313_s4 + $0x18] sm:$0xff]  ;;  %s675_s6 = scalar_lea.sflag [#allocation5], %s1168_s10  ;;  %s943_s23 = scalar_lea.vmem %s1263_s18, 1024 }
  0x40   : > { %v403_v41 = vld [vmem:[%s1313_s4] sm:$0xff]  ;;  %v405_v48 = vld [vmem:[%s1313_s4 + $0x10] sm:$0xff]  ;;  %p944_p6 = scmp.ne.s32.totalorder %s1263_s18, %s943_s23  ;;  %p1323_p11 = scmp.ne.s32.totalorder %s1320_s14, 0 }
  0x41   : > { %316 = vadd.xlane.f32.xlu1 %v315_v10  ;;  %s1018_s24 = smov [#allocation6]  }
  0x42   : > { %310 = vadd.xlane.f32.xlu0 %v309_v11  ;;  %p945_p12 = pnand %p944_p6, %p1323_p11  ;;  %s947_s25 = sshll.u32 %s1018_s24, 4  ;;  %s948_s25 = int_to_ptr.vmem [resolvable:$false] %s947_s25 }
  0x43   : > { %s949_s16 = scalar_lea.vmem %s948_s25, 2048  ;;  %p950_p8 = scmp.lt.s32.totalorder %s1263_s18, %s948_s25 }
  0x44   : > { %p946_p13 = pneg %p945_p12  ;;  %p951_p10 = scmp.lt.s32.totalorder %s949_s16, %s943_s23 }
  0x46   : > { %p952_p0 = por %p951_p10, %p950_p8 }
  0x48   : > { %p953_p2 = pnand %p952_p0, %p946_p13 }
  0xca   : > { %v314_v14 = vpop.xlane.xlu1 %313 }
  0xcb   : > { %v308_v15 = vpop.xlane.xlu0 %307  ;;  %v320_v20 = vmul.f32 0.00390625, %v314_v14  ;;  %v535_v14 = vstv %s534_s30 }
  0xcc   : > { %v318_v18 = vmul.f32 0.00390625, %v308_v15 }
  0xce   : > { %v317_v16 = vpop.xlane.xlu1 %316 }
  0xcf   : > { %v311_v17 = vpop.xlane.xlu0 %310  ;;  %v321_v21 = vmul.f32 0.00390625, %v317_v16 }
  0xd0   : > { %v319_v19 = vmul.f32 0.00390625, %v311_v17 }
  0xd1   : > { %v823_v23 = vpack.c.bf16 %v321_v21, %v320_v20 }
  0xd2   : > { %v820_v22 = vpack.c.bf16 %v319_v19, %v318_v18 }
  0xd4   : > { %821 = vmatpush3.bf16.msra.mxu0 %v820_v22 }
  0xd5   : > { %822 = vmatprep.subr.bf16.mxu0 %v1014_v12 }
  0xd8   : > { %824 = vmatpush3.bf16.msra.mxu0 %v823_v23  ;;  %v642_v23 = vlaneseq }
  0xdb   : > { %809 = vmatmul.mubr.msk.f32.vlgmr.msra.gmra.mrb[0].mxu0 %vm324_vm1, %v322_v24  ;;  %v643_v24 = vshrl.u32 %v642_v23, 7 }
 0x1ae   : > { %v394_v27 = vpop.f32.mrb[0].mxu0 }
 0x1af   : > { %v395_v28 = vadd.f32 %v394_v27, %v323_v26  ;;  %v810_v29 = vpop.f32.mrb[1].mxu0  ;;  %v644_v26 = vsub.s32 0, %v643_v24 }
 0x1b1   : > { %v398_v30 = vmax.f32 %v395_v28, 0.0 }
 0x1b3   : > { %811 = vmatprep.subr.msk.mxu1 %vm420_vm3, %v398_v30 }
 0x1b4   : > { %812 = vmatpush3.msk.msra.mxu1 %vm420_vm3, %v398_v30 }
 0x1b5   : > { %814 = vmatmul.mubr.msk.f32.vlgmr.msra.gmra.mrb[0].mxu1 %vm407_vm2, %v400_v33  ;;  %826 = vmatprep.subr.bf16.mxu1 %v825_v31 }
 0x1b6   : > { %816 = vmatprep.mubr.msk.f32.mxu1 %vm407_vm2, %v401_v34  ;;  %828 = vmatpush1.bf16.msra.mxu1 %v827_v32 }
 0x1b7   : > { %830 = vmatprep.subr.bf16.mxu1 %v829_v35 }
 0x1b9   : > { %817 = vmatmul.mubr.msk.f32.gmra.mrb[2].mxu1 %vm407_vm2, %v402_v37 }
 0x1ba   : > { %832 = vmatpush1.bf16.msra.mxu1 %v831_v36  ;;  %603 = vmatprep.mubr.f32.mxu1 %v1016_v13 }
 0x1bd   : > { %780 = vmatmul.mubr.msk.f32.vlgmr.msra.gmra.mrb[4].mxu1 %vm324_vm1, %v533_v38 }
 0x288   : > { %v815_v42 = vpop.f32.mrb[0].mxu1 }
 0x289   : > { %v496_v43 = vadd.f32 %v815_v42, %v404_v40  ;;  %v490_v44 = vpop.f32.mrb[1].mxu1 }
 0x28a   : > { %v491_v45 = vadd.f32 %v490_v44, %v403_v41 }
 0x28b   : > { %v777_v47 = vmul.f32 -1.442695, %v496_v43 }
 0x28c   : > { %v776_v49 = vmul.f32 -1.442695, %v491_v45  ;;  %v818_v50 = vpop.f32.mrb[2].mxu1 }
 0x28d   : > { %889 = vpow2.f32 %v777_v47  ;;  %v506_v51 = vadd.f32 %v818_v50, %v406_v46  ;;  %v500_v52 = vpop.f32.mrb[3].mxu1 }
 0x28e   : > { %891 = vpow2.f32 %v776_v49  ;;  %v501_v53 = vadd.f32 %v500_v52, %v405_v48 }
 0x28f   : > { %v779_v54 = vmul.f32 -1.442695, %v506_v51 }
 0x290   : > { %v778_v55 = vmul.f32 -1.442695, %v501_v53  ;;  %v605_v56 = vpop.f32.mrb[4].mxu1 }
 0x291   : > { %893 = vpow2.f32 %v779_v54  ;;  %v607_v57 = vpop.f32.mrb[5].mxu1  ;;  %v606_v15 = vadd.f32 %v605_v56, %v535_v14 }
 0x292   : > { %895 = vpow2.f32 %v778_v55  ;;  %v608_v16 = vadd.f32 %v607_v57, %v535_v14 }
 0x293   : > { %v781_v17 = vmul.f32 -1.442695, %v606_v15 }
 0x294   : > { %v782_v18 = vmul.f32 -1.442695, %v608_v16 }
 0x297   : > { %v890_v58 = vpop.eup %889 }
 0x298   : > { %v892_v59 = vpop.eup %891  ;;  %v522_v60 = vadd.f32 1.0, %v890_v58 }
 0x299   : > { %v521_v61 = vadd.f32 1.0, %v892_v59 }
 0x29a   : > { %897 = vrcp.f32 %v522_v60 }
 0x29b   : > { %v894_v62 = vpop.eup %893  ;;  %899 = vrcp.f32 %v521_v61 }
 0x29c   : > { %v896_v63 = vpop.eup %895  ;;  %v524_v7 = vadd.f32 1.0, %v894_v62 }
 0x29d   : > { %v523_v3 = vadd.f32 1.0, %v896_v63 }
 0x29f   : > { %901 = vrcp.f32 %v523_v3 }
 0x2a0   : > { %903 = vrcp.f32 %v524_v7 }
 0x2a1   : > { %905 = vpow2.f32 %v781_v17 }
 0x2a2   : > { %907 = vpow2.f32 %v782_v18 }
 0x2a4   : > { %v898_v10 = vpop.eup %897 }
 0x2a5   : > { %v900_v11 = vpop.eup %899  ;;  %629 = vperm.xlu1 %888, %v898_v10  }
 0x2a6   : > { %624 = vperm.xlu0 %887, %v900_v11  }
 0x2a9   : > { %v902_v12 = vpop.eup %901 }
 0x2aa   : > { %634 = vperm.xlu1 %888, %v902_v12   ;;  %v904_v13 = vpop.eup %903 }
 0x2ab   : > { %v906_v19 = vpop.eup %905 }
 0x2ac   : > { %v908_v20 = vpop.eup %907  ;;  %v616_v21 = vadd.f32 1.0, %v906_v19 }
 0x2ad   : > { %v617_v22 = vadd.f32 1.0, %v908_v20 }
 0x2ae   : > { %639 = vperm.xlu1 %888, %v904_v13   ;;  %909 = vrcp.f32 %v616_v21 }
 0x2af   : > { %911 = vrcp.f32 %v617_v22 }
 0x2b8   : > { %v910_v25 = vpop.eup %909 }
 0x2b9   : > { %v912_v27 = vpop.eup %911  ;;  %v645_v28 = vrot.slane %v910_v25, %v644_v26 }
 0x2ba   : > { %v649_v29 = vrot.slane %v912_v27, %v644_v26 }
 0x324   : > { %v630_v30 = vpop.permute.xlu1 %629 }
 0x325   : > { %v652_v31 = vadd.f32 %v645_v28, %v630_v30  ;;  %v653_v32 = vadd.f32 %v649_v29, %v630_v30  ;;  %v625_v33 = vpop.permute.xlu0 %624 }
 0x326   : > { %v650_v34 = vadd.f32 %v645_v28, %v625_v33  ;;  %v651_v35 = vadd.f32 %v649_v29, %v625_v33 }
 0x327   : > { %v660_v36 = vmul.f32 %v652_v31, %v1194_v8  ;;  %v661_v37 = vmul.f32 %v653_v32, %v1196_v9 }
 0x328   : > { %v658_v38 = vmul.f32 %v650_v34, %v1182_v2  ;;  %v659_v39 = vmul.f32 %v651_v35, %v1186_v4 }
 0x329   : > { %668 = vst [vmem:[%s297_s9 + $0x10] sm:$0xff] %v660_v36  ;;  %669 = vst [vmem:[%s297_s9 + $0x18] sm:$0xff] %v661_v37  ;;  %v635_v40 = vpop.permute.xlu1 %634 }
 0x32a   : > { %666 = vst [vmem:[%s297_s9] sm:$0xff] %v658_v38  ;;  %667 = vst [vmem:[%s297_s9 + $0x8] sm:$0xff] %v659_v39  ;;  %v654_v41 = vadd.f32 %v645_v28, %v635_v40  ;;  %v655_v42 = vadd.f32 %v649_v29, %v635_v40 }
 0x32c   : > { %v662_v43 = vmul.f32 %v654_v41, %v1178_v0  ;;  %v663_v8 = vmul.f32 %v655_v42, %v1180_v1 }
 0x32d   : > { %v640_v2 = vpop.permute.xlu1 %639 }
 0x32e   : > { %670 = vst [vmem:[%s297_s9 + $0x20] sm:$0xff] %v662_v43  ;;  %671 = vst [vmem:[%s297_s9 + $0x28] sm:$0xff] %v663_v8  ;;  %v656_v4 = vadd.f32 %v645_v28, %v640_v2  ;;  %v657_v9 = vadd.f32 %v649_v29, %v640_v2 }
 0x330   : > { %v664_v0 = vmul.f32 %v656_v4, %v1188_v5  ;;  %v665_v1 = vmul.f32 %v657_v9, %v1190_v6 }
 0x332   : > { %672 = vst [vmem:[%s297_s9 + $0x30] sm:$0xff] %v664_v0  ;;  %673 = vst [vmem:[%s297_s9 + $0x38] sm:$0xff] %v665_v1 }
 0x333   : > { %956 = shalt.err (!%p953_p2)
}
 0x334   : > { %s957_s19 = scalar_lea.hbm %s1261_s21, 1024  ;;  %s961_s30 = scalar_lea.hbm %s1316_s7, 2048 }
 0x335   : > { %p958_p4 = scmp.ne.s32.totalorder %s1261_s21, %s957_s19  ;;  %p962_p9 = scmp.lt.u32.totalorder %s1261_s21, %s1316_s7 }
 0x336   : > { %p963_p1 = scmp.lt.u32.totalorder %s961_s30, %s957_s19  ;;  %p965_p6 = scmp.lt.u32.totalorder %s957_s19, %s1261_s21 }
 0x337   : > { %p959_p5 = pnand %p958_p4, %p1323_p11 }
 0x338   : > { %p964_p3 = por %p963_p1, %p962_p9 }
 0x339   : > { %p960_p7 = pneg %p959_p5 }
 0x33a   : > { %p966_p12 = por %p965_p6, %p964_p3 }
 0x33c   : > { %p967_p13 = pnand %p966_p12, %p960_p7 }
 0x33e   : > { %970 = shalt.err (!%p967_p13)
}
 0x33f   : > { %s1019_s12 = smov 256   ;;  %s1020_s13 = smov 16  }
 0x340   : > { %835 = dma.vmem_to_hbm [thread:$0]  (%p1323_p11), %s1263_s18, 1024, %s1261_s21, %s675_s6, %s1019_s12, %s1019_s12, %s1020_s13  }
 0x341 PF: > { %s703_s23 = sand.u32 1, %s997_s26   ;;  %p1324_p8 = scmp.ne.s32.totalorder %s1321_s15, 0 }
 0x342   : > { %p1325_p10 = scmp.ge.s32.totalorder %s1009_s29, 2  ;;  %s704_s24 = scalar_lea.sflag [#allocation5], %s703_s23 }
 0x344   : > { %p842_p0 = pnand %p1325_p10, %p1324_p8 }
 0x346   : > { %992 = dma.done.wait (!%p842_p0), %s704_s24, 1024  }
 0x347   : > { %994 = vsyncadd (!%p842_p0), %s704_s24, 4294966272  ;;  %p21_p2 = scmp.ge.s32.totalorder %s1089_s8, 4   ;;  %s1326_s26 = smov %s1001_s27 }
 0x348   : > { %s1327_s27 = smov %s1005_s28  ;;  %s1328_s28 = smov %s1101_s11 }
 0x349   : > { %s1329_s29 = smov %s1089_s8  ;;  %23 = sbr.rel (!%p21_p2) target bundleno = 7 (0x7), region = 93 }
 0x350   :  { %709 = vsyncpa [#allocation4], 1 }
 0x351   :  { %711 = vsyncpa [#allocation4 + $0x1], 1 }
 0x352   :  { %712 = vsyncpa [#allocation5], 1 }
 0x353   :  { %714 = vsyncpa [#allocation5 + $0x1], 1 }

</bundles_post_ra>
